<compile_context>
chip_gen: v7x
topology: tpu7x:2x2x1
jax: 0.10.0
libtpu: 0.0.40
codegen_flags: <defaults>
</compile_context>

<pallas_src>
import jax
import jax.numpy as jnp
from jax.experimental import pallas as pl
from jax.experimental.pallas import tpu as pltpu
import numpy as np

# Deterministic "parameters" of the module (used by the pure-JAX reference).
# NOTE: reproduced exactly, including the original module's -2 at KERNEL_X[2,2].
KERNEL_X = np.array([[1, 0, -1],
                     [2, 0, -2],
                     [1, 0, -2]], dtype=np.float32)
KERNEL_Y = np.array([[1, 2, 1],
                     [0, 0, 0],
                     [-1, -2, -1]], dtype=np.float32)


def _make_grad_kernel(th, w):
    o = 7  # extended row (o + i) holds image row (tile_row0 + i - 1)

    def grad_kernel(x_ref, top_ref, bot_ref, gx_ref, gy_ref):
        h = pl.program_id(1)
        nh = pl.num_programs(1)

        x = x_ref[...]                                   # (bb, th, w) rows of this tile
        dt = x.dtype
        # 8-row halo blocks from the clamped index maps; zero them at the real
        # image border so they reproduce conv2d's zero padding.
        top8 = top_ref[...] * (h > 0).astype(dt)         # image rows [row0-8, row0)
        bot8 = bot_ref[...] * (h < nh - 1).astype(dt)    # image rows [row0+th, row0+th+8)

        # Extended tile: row r holds image row (row0 + r - 8), zero outside the image.
        xe = jnp.concatenate([top8, x, bot8], axis=1)    # (bb, th+16, w)

        # Horizontal (lane) shifted slabs with zero fill, computed once and
        # shared between both filters (hoisted column shifts).
        zc = jnp.zeros_like(xe[:, :, :1])
        xm = jnp.concatenate([zc, xe[:, :, :w - 1]], axis=2)   # column j-1
        xp = jnp.concatenate([xe[:, :, 1:], zc], axis=2)       # column j+1

        # x-gradient: vertical [1,2,1] blur of the horizontal difference, plus the
        # module's extra -1 at tap (2,2) (KERNEL_X[2,2] == -2, not the Sobel -1).
        hx = xm - xp
        gx_ref[...] = (hx[:, o:o + th] + 2.0 * hx[:, o + 1:o + 1 + th]
                       + hx[:, o + 2:o + 2 + th] - xp[:, o + 2:o + 2 + th])

        # y-gradient: vertical [1,0,-1] of the horizontal [1,2,1] blur.
        hy = xm + 2.0 * xe + xp
        gy_ref[...] = hy[:, o:o + th] - hy[:, o + 2:o + 2 + th]

    return grad_kernel


def _pick_tiles(N, H, W, block_bytes):
    """Pick (batch, rows) per block so one f32 block stays within block_bytes."""
    row_bytes = W * 4
    if H * row_bytes <= block_bytes:
        TH = H                                     # whole image height in one block
    else:
        TH = None
        for cand in range(H - H % 8, 7, -8):       # largest multiple-of-8 divisor of H that fits
            if H % cand == 0 and cand * row_bytes <= block_bytes:
                TH = cand
                break
        if TH is None:
            # TODO(synk): no suitable row-tile divisor; whole-H block may exceed VMEM
            # for very large, awkwardly-sized images.
            TH = H
    BB = 1
    for cand in range(1, N + 1):                   # largest batch divisor that still fits
        if N % cand == 0 and cand * TH * row_bytes <= block_bytes:
            BB = cand
    return BB, TH


def image_gradient(img, *, block_bytes=1 << 20):
    """img: (N, 1, H, W) -> (x_grad, y_grad), each (N, 1, H, W) float32."""
    img = jnp.asarray(img, jnp.float32)
    N, C, H, W = img.shape
    assert C == 1, "image_gradient expects a single input channel"
    assert H >= 8, "kernel assumes H >= 8"  # TODO(synk): tiny-H fallback
    x = img[:, 0, :, :]                     # (N, H, W); dropping the size-1 dim is layout-free

    BB, TH = _pick_tiles(N, H, W, block_bytes)
    nb, nh = N // BB, H // TH
    thb = max(TH // 8, 1)                   # H-tile size in units of 8-row halo blocks
    last_hb = max(H // 8 - 1, 0)

    def center_map(b, h):
        return (b, h, 0)

    def top_map(b, h):                      # 8 rows ending just above the tile (clamped at the top)
        return (b, jnp.maximum(h * thb - 1, 0), 0)

    def bot_map(b, h):                      # 8 rows starting just below the tile (clamped at the bottom)
        return (b, jnp.minimum((h + 1) * thb, last_hb), 0)

    kernel = _make_grad_kernel(TH, W)

    gx, gy = pl.pallas_call(
        kernel,
        out_shape=(
            jax.ShapeDtypeStruct((N, H, W), jnp.float32),
            jax.ShapeDtypeStruct((N, H, W), jnp.float32),
        ),
        grid_spec=pltpu.PrefetchScalarGridSpec(
            num_scalar_prefetch=0,
            grid=(nb, nh),
            in_specs=[
                pl.BlockSpec((BB, TH, W), center_map),
                pl.BlockSpec((BB, 8, W), top_map),
                pl.BlockSpec((BB, 8, W), bot_map),
            ],
            out_specs=[
                pl.BlockSpec((BB, TH, W), center_map),
                pl.BlockSpec((BB, TH, W), center_map),
            ],
        ),
        compiler_params=pltpu.CompilerParams(
            dimension_semantics=("parallel", "parallel")),
    )(x, x, x)

    return gx[:, None, :, :], gy[:, None, :, :]


def _reference(img):
    """Pure-JAX reference (cross-correlation with zero padding) for validation."""
    N, C, H, W = img.shape
    x = img[:, 0, :, :].astype(jnp.float32)
    xp_ = jnp.pad(x, ((0, 0), (1, 1), (1, 1)))
    gx = jnp.zeros((N, H, W), jnp.float32)
    gy = jnp.zeros((N, H, W), jnp.float32)
    for di in range(3):
        for dj in range(3):
            win = xp_[:, di:di + H, dj:dj + W]
            gx = gx + float(KERNEL_X[di, dj]) * win
            gy = gy + float(KERNEL_Y[di, dj]) * win
    return gx[:, None], gy[:, None]


if __name__ == "__main__":
    key = jax.random.PRNGKey(0)
    # Small shape consistent with the module: NCHW with C=1.
    img = jax.random.normal(key, (2, 1, 16, 16), dtype=jnp.float32)

    x_grad, y_grad = image_gradient(img)
    jax.block_until_ready((x_grad, y_grad))

    rx, ry = _reference(img)
    np.testing.assert_allclose(np.asarray(x_grad), np.asarray(rx), rtol=1e-5, atol=1e-5)
    np.testing.assert_allclose(np.asarray(y_grad), np.asarray(ry), rtol=1e-5, atol=1e-5)

    print("KERNEL_OK")
</pallas_src>

<mosaic_0001>
module attributes {stable_mosaic.version = 11 : i64} {
  func.func @grad_kernel(%arg0: i32, %arg1: i32, %arg2: memref<2x16x16xf32, #tpu.memory_space<vmem>>, %arg3: memref<2x8x16xf32, #tpu.memory_space<vmem>>, %arg4: memref<2x8x16xf32, #tpu.memory_space<vmem>>, %arg5: memref<2x16x16xf32, #tpu.memory_space<vmem>>, %arg6: memref<2x16x16xf32, #tpu.memory_space<vmem>>) attributes {dimension_semantics = [#tpu.dimension_semantics<parallel>, #tpu.dimension_semantics<parallel>], iteration_bounds = array<i64: 1, 1>, scalar_prefetch = 0 : i64, scratch_operands = 0 : i64, tpu.core_type = #tpu.core_type<tc>, window_params = [{transform_indices = @transform_0, window_bounds = array<i64: 2, 16, 16>}, {transform_indices = @transform_1, window_bounds = array<i64: 2, 8, 16>}, {transform_indices = @transform_2, window_bounds = array<i64: 2, 8, 16>}, {transform_indices = @transform_3, window_bounds = array<i64: 2, 16, 16>}, {transform_indices = @transform_4, window_bounds = array<i64: 2, 16, 16>}]} {
    %c0 = arith.constant 0 : index
    %c0_0 = arith.constant 0 : index
    %c0_1 = arith.constant 0 : index
    %0 = vector.load %arg2[%c0, %c0_0, %c0_1] : memref<2x16x16xf32, #tpu.memory_space<vmem>>, vector<2x16x16xf32>
    %c0_2 = arith.constant 0 : index
    %c0_3 = arith.constant 0 : index
    %c0_4 = arith.constant 0 : index
    %1 = vector.load %arg3[%c0_2, %c0_3, %c0_4] : memref<2x8x16xf32, #tpu.memory_space<vmem>>, vector<2x8x16xf32>
    %c0_i32 = arith.constant 0 : i32
    %2 = arith.cmpi sgt, %arg1, %c0_i32 : i32
    %3 = arith.extui %2 : i1 to i32
    %4 = arith.sitofp %3 : i32 to f32
    %5 = vector.broadcast %4 : f32 to vector<2x8x16xf32>
    %6 = arith.mulf %1, %5 : vector<2x8x16xf32>
    %c0_5 = arith.constant 0 : index
    %c0_6 = arith.constant 0 : index
    %c0_7 = arith.constant 0 : index
    %7 = vector.load %arg4[%c0_5, %c0_6, %c0_7] : memref<2x8x16xf32, #tpu.memory_space<vmem>>, vector<2x8x16xf32>
    %c0_i32_8 = arith.constant 0 : i32
    %8 = arith.cmpi slt, %arg1, %c0_i32_8 : i32
    %9 = arith.extui %8 : i1 to i32
    %10 = arith.sitofp %9 : i32 to f32
    %11 = vector.broadcast %10 : f32 to vector<2x8x16xf32>
    %12 = arith.mulf %7, %11 : vector<2x8x16xf32>
    %13 = tpu.concatenate %6, %0, %12 in 1 : vector<2x8x16xf32>, vector<2x16x16xf32>, vector<2x8x16xf32> -> vector<2x32x16xf32>
    %cst = arith.constant 0.000000e+00 : f32
    %14 = vector.broadcast %cst : f32 to vector<2x32x1xf32>
    %15 = vector.extract_strided_slice %13 {offsets = [0, 0, 0], sizes = [2, 32, 15], strides = [1, 1, 1]} : vector<2x32x16xf32> to vector<2x32x15xf32>
    %16 = tpu.concatenate %14, %15 in 2 : vector<2x32x1xf32>, vector<2x32x15xf32> -> vector<2x32x16xf32>
    %17 = vector.extract_strided_slice %13 {offsets = [0, 0, 1], sizes = [2, 32, 15], strides = [1, 1, 1]} : vector<2x32x16xf32> to vector<2x32x15xf32>
    %18 = tpu.concatenate %17, %14 in 2 : vector<2x32x15xf32>, vector<2x32x1xf32> -> vector<2x32x16xf32>
    %19 = arith.subf %16, %18 : vector<2x32x16xf32>
    %20 = vector.extract_strided_slice %19 {offsets = [0, 7, 0], sizes = [2, 16, 16], strides = [1, 1, 1]} : vector<2x32x16xf32> to vector<2x16x16xf32>
    %21 = vector.extract_strided_slice %19 {offsets = [0, 8, 0], sizes = [2, 16, 16], strides = [1, 1, 1]} : vector<2x32x16xf32> to vector<2x16x16xf32>
    %cst_9 = arith.constant 2.000000e+00 : f32
    %22 = vector.broadcast %cst_9 : f32 to vector<2x16x16xf32>
    %23 = arith.mulf %22, %21 : vector<2x16x16xf32>
    %24 = arith.addf %20, %23 : vector<2x16x16xf32>
    %25 = vector.extract_strided_slice %19 {offsets = [0, 9, 0], sizes = [2, 16, 16], strides = [1, 1, 1]} : vector<2x32x16xf32> to vector<2x16x16xf32>
    %26 = arith.addf %24, %25 : vector<2x16x16xf32>
    %27 = vector.extract_strided_slice %18 {offsets = [0, 9, 0], sizes = [2, 16, 16], strides = [1, 1, 1]} : vector<2x32x16xf32> to vector<2x16x16xf32>
    %28 = arith.subf %26, %27 : vector<2x16x16xf32>
    %c0_10 = arith.constant 0 : index
    %c0_11 = arith.constant 0 : index
    %c0_12 = arith.constant 0 : index
    %29 = vector.load %arg5[%c0_10, %c0_11, %c0_12] : memref<2x16x16xf32, #tpu.memory_space<vmem>>, vector<2x16x16xf32>
    tpu.vector_store %arg5[%c0_10, %c0_11, %c0_12], %28 {strides = array<i32>} : memref<2x16x16xf32, #tpu.memory_space<vmem>>, vector<2x16x16xf32>,
    %cst_13 = arith.constant 2.000000e+00 : f32
    %30 = vector.broadcast %cst_13 : f32 to vector<2x32x16xf32>
    %31 = arith.mulf %30, %13 : vector<2x32x16xf32>
    %32 = arith.addf %16, %31 : vector<2x32x16xf32>
    %33 = arith.addf %32, %18 : vector<2x32x16xf32>
    %34 = vector.extract_strided_slice %33 {offsets = [0, 7, 0], sizes = [2, 16, 16], strides = [1, 1, 1]} : vector<2x32x16xf32> to vector<2x16x16xf32>
    %35 = vector.extract_strided_slice %33 {offsets = [0, 9, 0], sizes = [2, 16, 16], strides = [1, 1, 1]} : vector<2x32x16xf32> to vector<2x16x16xf32>
    %36 = arith.subf %34, %35 : vector<2x16x16xf32>
    %c0_14 = arith.constant 0 : index
    %c0_15 = arith.constant 0 : index
    %c0_16 = arith.constant 0 : index
    %37 = vector.load %arg6[%c0_14, %c0_15, %c0_16] : memref<2x16x16xf32, #tpu.memory_space<vmem>>, vector<2x16x16xf32>
    tpu.vector_store %arg6[%c0_14, %c0_15, %c0_16], %36 {strides = array<i32>} : memref<2x16x16xf32, #tpu.memory_space<vmem>>, vector<2x16x16xf32>,
    return
  }
  func.func @transform_0(%arg0: i32, %arg1: i32) -> (i32, i32, i32) {
    %c0_i32 = arith.constant 0 : i32
    %c0_i32_0 = arith.constant 0 : i32
    return %arg0, %arg1, %c0_i32 : i32, i32, i32
  }
  func.func @transform_1(%arg0: i32, %arg1: i32) -> (i32, i32, i32) {
    %c2_i32 = arith.constant 2 : i32
    %0 = arith.muli %arg1, %c2_i32 : i32
    %c1_i32 = arith.constant 1 : i32
    %1 = arith.subi %0, %c1_i32 : i32
    %c0_i32 = arith.constant 0 : i32
    %2 = arith.maxsi %1, %c0_i32 : i32
    %c0_i32_0 = arith.constant 0 : i32
    %c0_i32_1 = arith.constant 0 : i32
    return %arg0, %2, %c0_i32_0 : i32, i32, i32
  }
  func.func @transform_2(%arg0: i32, %arg1: i32) -> (i32, i32, i32) {
    %c1_i32 = arith.constant 1 : i32
    %0 = arith.addi %arg1, %c1_i32 : i32
    %c2_i32 = arith.constant 2 : i32
    %1 = arith.muli %0, %c2_i32 : i32
    %c1_i32_0 = arith.constant 1 : i32
    %2 = arith.minsi %1, %c1_i32_0 : i32
    %c0_i32 = arith.constant 0 : i32
    %c0_i32_1 = arith.constant 0 : i32
    return %arg0, %2, %c0_i32 : i32, i32, i32
  }
  func.func @transform_3(%arg0: i32, %arg1: i32) -> (i32, i32, i32) {
    %c0_i32 = arith.constant 0 : i32
    %c0_i32_0 = arith.constant 0 : i32
    return %arg0, %arg1, %c0_i32 : i32, i32, i32
  }
  func.func @transform_4(%arg0: i32, %arg1: i32) -> (i32, i32, i32) {
    %c0_i32 = arith.constant 0 : i32
    %c0_i32_0 = arith.constant 0 : i32
    return %arg0, %arg1, %c0_i32 : i32, i32, i32
  }
}

</mosaic_0001>

<bundles_post_ra>
// kernel: tpu_custom_call.1
= control target key start
LH: loop header
LB: loop body
LE: loop exit
PB: predicated region body
PF: predicated region fallthrough
CT: control target
= control target key end

     0   :  { %10 = vsyncpa [#allocation3], 0  ;;  %s753_s0 = inlined_call_operand.hbm [shape: f32[2,16,16], index: 0, kind: input, shape index: {}]   ;;  %s754_s1 = inlined_call_operand.hbm [shape: f32[2,16,16], index: 1, kind: input, shape index: {}]   ;;  %s755_s2 = inlined_call_operand.hbm [shape: f32[2,16,16], index: 2, kind: input, shape index: {}]   ;;  %s756_s3 = inlined_call_operand.hbm [shape: f32[2,16,16], index: 3, kind: output, shape index: {0}]   ;;  %s757_s4 = inlined_call_operand.hbm [shape: f32[2,16,16], index: 4, kind: output, shape index: {1}]  }
   0x1   :  { %11 = vsyncpa [#allocation6], 0 }
   0x2   :  { %12 = vsyncpa [#allocation4], 0 }
   0x3   :  { %13 = vsyncpa [#allocation10], 0  ;;  %s501_s15 = smov [#allocation5]   ;;  %s502_s17 = smov [#allocation2]  }
   0x4   :  { %s37_s16 = sshll.u32 %s501_s15, 4  ;;  %s19_s18 = sshll.u32 %s502_s17, 4  ;;  %s38_s16 = int_to_ptr.vmem [resolvable:$true] %s37_s16  ;;  %s20_s18 = int_to_ptr.vmem [resolvable:$true] %s19_s18 }
   0x5   :  { %s380_s21 = scalar_lea.hbm %s754_s1, 256  ;;  %s382_s26 = scalar_lea.hbm %s754_s1, 512 }
   0x6   :  { %p381_p0 = scmp.ne.s32.totalorder %s754_s1, %s380_s21  ;;  %p383_p1 = scmp.lt.u32.totalorder %s382_s26, %s380_s21 }
   0x7   :  { %p384_p2 = scmp.lt.u32.totalorder %s380_s21, %s754_s1 }
   0x9   :  { %p385_p3 = por %p384_p2, %p383_p1 }
   0xb   :  { %p386_p4 = pnand %p385_p3, %p381_p0 }
   0xd   :  { %389 = shalt.err (!%p386_p4)
}
   0xe   :  { %s390_s29 = scalar_lea.vmem %s38_s16, 256  ;;  %p395_p6 = scmp.lt.s32.totalorder %s38_s16, %s38_s16 }
   0xf   :  { %p391_p5 = scmp.ne.s32.totalorder %s38_s16, %s390_s29  ;;  %p396_p7 = scmp.lt.s32.totalorder %s390_s29, %s390_s29 }
  0x11   :  { %p397_p8 = por %p396_p7, %p395_p6 }
  0x13   :  { %p398_p9 = pnand %p397_p8, %p391_p5 }
  0x15   :  { %401 = shalt.err (!%p398_p9)
}
  0x16   :  { %s503_s30 = smov 256   ;;  %s504_s5 = smov 128  }
  0x17   :  { %s505_s6 = smov 8   ;;  %s402_s11 = scalar_lea.hbm %s753_s0, 512 }
  0x18   :  { %43 = dma.hbm_to_vmem [thread:$0]  %s754_s1, 256, %s38_s16, [#allocation6], %s503_s30, %s504_s5, %s505_s6  }
  0x19   :  { %p403_p10 = scmp.ne.s32.totalorder %s753_s0, %s402_s11  ;;  %p406_p11 = scmp.lt.u32.totalorder %s402_s11, %s753_s0 }
  0x1b   :  { %p408_p12 = pnand %p406_p11, %p403_p10 }
  0x1d   :  { %411 = shalt.err (!%p408_p12)
}
  0x1e   :  { %s412_s17 = scalar_lea.vmem %s20_s18, 512  ;;  %p417_p0 = scmp.lt.s32.totalorder %s20_s18, %s20_s18 }
  0x1f   :  { %p413_p13 = scmp.ne.s32.totalorder %s20_s18, %s412_s17  ;;  %p418_p1 = scmp.lt.s32.totalorder %s412_s17, %s412_s17 }
  0x21   :  { %p419_p2 = por %p418_p1, %p417_p0 }
  0x23   :  { %p420_p3 = pnand %p419_p2, %p413_p13 }
  0x25   :  { %423 = shalt.err (!%p420_p3)
}
  0x26   :  { %25 = dma.hbm_to_vmem [thread:$0]  %s753_s0, 512, %s20_s18, [#allocation3], %s504_s5, %s504_s5, %s505_s6  }
  0x27   :  { %s54_s21 = scalar_lea.hbm %s755_s2, 128  ;;  %s506_s22 = smov [#allocation7]  }
  0x28   :  { %s55_s23 = sshll.u32 %s506_s22, 4  ;;  %s448_s26 = scalar_lea.hbm %s755_s2, 384  ;;  %s56_s23 = int_to_ptr.vmem [resolvable:$true] %s55_s23 }
  0x29   :  { %p425_p4 = scmp.ne.s32.totalorder %s54_s21, %s448_s26  ;;  %s426_s29 = scalar_lea.hbm %s755_s2, 512 }
  0x2a   :  { %p427_p5 = scmp.lt.u32.totalorder %s54_s21, %s755_s2  ;;  %p428_p6 = scmp.lt.u32.totalorder %s426_s29, %s448_s26 }
  0x2b   :  { %p430_p8 = scmp.lt.u32.totalorder %s448_s26, %s54_s21 }
  0x2c   :  { %p429_p7 = por %p428_p6, %p427_p5 }
  0x2e   :  { %p431_p9 = por %p430_p8, %p429_p7 }
  0x30   :  { %p432_p10 = pnand %p431_p9, %p425_p4 }
  0x32   :  { %435 = shalt.err (!%p432_p10)
}
  0x33   :  { %s436_s0 = scalar_lea.vmem %s56_s23, 256  ;;  %p441_p12 = scmp.lt.s32.totalorder %s56_s23, %s56_s23 }
  0x34   :  { %p437_p11 = scmp.ne.s32.totalorder %s56_s23, %s436_s0  ;;  %p442_p13 = scmp.lt.s32.totalorder %s436_s0, %s436_s0 }
  0x36   :  { %p443_p0 = por %p442_p13, %p441_p12 }
  0x38   :  { %p444_p1 = pnand %p443_p0, %p437_p11 }
  0x3a   :  { %447 = shalt.err (!%p444_p1)
}
  0x3b   :  { %61 = dma.hbm_to_vmem [thread:$0]  %s54_s21, 256, %s56_s23, [#allocation6], %s503_s30, %s504_s5, %s505_s6  }
  0x3c   :  { %493 = dma.done.wait [#allocation3], 512  }
  0x3d   :  { %494 = vsyncadd [#allocation3], 4294966784 }
  0x3e   :  { %495 = dma.done.wait [#allocation6], 512  }
  0x3f   :  { %496 = vsyncadd [#allocation6], 4294966784  ;;  %v81_v0 = vld [vmem:[#allocation2 + $0x10] sm:$0xff]  ;;  %v79_v1 = vld [vmem:[#allocation2] sm:$0xff]  ;;  %s507_s2 = smov 1   ;;  %s508_s18 = smov 127  }
  0x40   :  { %117 = vrot.lane.b32.xlu1 %v81_v0, %s507_s2  ;;  %109 = vrot.lane.b32.xlu0 %v79_v1, %s507_s2  ;;  %v82_v2 = vld [vmem:[#allocation2 + $0x18] sm:$0xff]  ;;  %v80_v3 = vld [vmem:[#allocation2 + $0x8] sm:$0xff]  ;;  %v91_v5 = vld [vmem:[#allocation7] sm:$0xff]  ;;  %vm131_vm0 = vcmask 7168   ;;  %v275_v17 = vmul.f32 2.0, %v79_v1  ;;  %vm164_vm1 = vcmask 121856  }
  0x41   :  { %v92_v4 = vld [vmem:[#allocation7 + $0x8] sm:$0xff]  ;;  %v97_v7 = vmul.f32 0.0, %v91_v5  ;;  %v84_v8 = vld [vmem:[#allocation5 + $0x8] sm:$0xff]  ;;  %v83_v9 = vld [vmem:[#allocation5] sm:$0xff]  ;;  %v276_v15 = vmul.f32 2.0, %v80_v3  ;;  %vm214_vm2 = vcmask 1045504  }
  0x42   :  { %v98_v6 = vmul.f32 0.0, %v92_v4  ;;  %v90_v10 = vmul.f32 0.0, %v84_v8  ;;  %v89_v11 = vmul.f32 0.0, %v83_v9  ;;  %v279_v21 = vmul.f32 2.0, %v81_v0  ;;  %s509_s30 = smov [#allocation9]   ;;  %s510_s10 = smov [#allocation8]  }
  0x43   :  { %v280_v22 = vmul.f32 2.0, %v82_v2  ;;  %vm267_vm3 = vcmask 130048   ;;  %v277_v34 = vmul.f32 2.0, %v97_v7  ;;  %vm189_vm4 = vcmask 1046528   ;;  %s349_s9 = sshll.u32 %s509_s30, 4  ;;  %s337_s11 = sshll.u32 %s510_s10, 4  ;;  %s350_s9 = int_to_ptr.vmem [resolvable:$true] %s349_s9  ;;  %s338_s11 = int_to_ptr.vmem [resolvable:$true] %s337_s11 }
  0x44   :  { %119 = vrot.lane.b32.xlu1 %v82_v2, %s507_s2  ;;  %111 = vrot.lane.b32.xlu0 %v80_v3, %s507_s2  ;;  %v281_v32 = vmul.f32 2.0, %v98_v6  ;;  %v603_v35 = vmul.f32 2.0, %v90_v10  ;;  %v605_v36 = vmul.f32 2.0, %v89_v11  ;;  %vm269_vm5 = vcmask 129024   ;;  %s449_s12 = scalar_lea.vmem %s350_s9, 512  ;;  %p454_p3 = scmp.lt.s32.totalorder %s350_s9, %s350_s9 }
  0x45   :  { %vm265_vm6 = vcmask 130055   ;;  %p450_p2 = scmp.ne.s32.totalorder %s350_s9, %s449_s12  ;;  %p455_p4 = scmp.lt.s32.totalorder %s449_s12, %s449_s12 }
  0x47   :  { %p456_p5 = por %p455_p4, %p454_p3 }
  0x48   :  { %144 = vrot.lane.b32.xlu1 %v80_v3, %s508_s18  ;;  %142 = vrot.lane.b32.xlu0 %v79_v1, %s508_s18 }
  0x49   :  { %p457_p6 = pnand %p456_p5, %p450_p2 }
  0x4c   :  { %152 = vrot.lane.b32.xlu1 %v82_v2, %s508_s18  ;;  %150 = vrot.lane.b32.xlu0 %v81_v0, %s508_s18 }
  0x50   :  { %121 = vrot.lane.b32.xlu1 %v98_v6, %s507_s2  ;;  %113 = vrot.lane.b32.xlu0 %v97_v7, %s507_s2 }
  0x54   :  { %154 = vrot.lane.b32.xlu1 %v98_v6, %s508_s18  ;;  %146 = vrot.lane.b32.xlu0 %v97_v7, %s508_s18 }
  0x58   :  { %115 = vrot.lane.b32.xlu1 %v90_v10, %s507_s2  ;;  %107 = vrot.lane.b32.xlu0 %v89_v11, %s507_s2 }
  0x5c   :  { %148 = vrot.lane.b32.xlu1 %v90_v10, %s508_s18  ;;  %140 = vrot.lane.b32.xlu0 %v89_v11, %s508_s18 }
  0xb2   :  { %v118_v12 = vpop.permute.xlu1 %117  ;;  %v110_v13 = vpop.permute.xlu0 %109 }
  0xb3   :  { %v133_v19 = vsel %vm131_vm0, 0.0, %v110_v13  ;;  %v137_v20 = vsel %vm131_vm0, 0.0, %v118_v12 }
  0xb4   :  { %v283_v26 = vadd.f32 %v275_v17, %v133_v19  ;;  %v287_v37 = vadd.f32 %v279_v21, %v137_v20 }
  0xb6   :  { %v120_v14 = vpop.permute.xlu1 %119  ;;  %v112_v16 = vpop.permute.xlu0 %111 }
  0xb7   :  { %v134_v18 = vsel %vm131_vm0, 0.0, %v112_v16  ;;  %v138_v27 = vsel %vm131_vm0, 0.0, %v120_v14 }
  0xb8   :  { %v284_v23 = vadd.f32 %v276_v15, %v134_v18  ;;  %v288_v38 = vadd.f32 %v280_v22, %v138_v27 }
  0xba   :  { %v145_v24 = vpop.permute.xlu1 %144  ;;  %v143_v25 = vpop.permute.xlu0 %142 }
  0xbb   :  { %v589_v28 = vsel %vm164_vm1, %v145_v24, 0.0  ;;  %v592_v29 = vsel %vm164_vm1, %v143_v25, 0.0 }
  0xbc   :  { %v595_v30 = vsub.f32 %v134_v18, %v589_v28  ;;  %v598_v31 = vadd.f32 %v284_v23, %v589_v28  ;;  %v601_v33 = vadd.f32 %v283_v26, %v592_v29  ;;  %v612_v43 = vsub.f32 %v133_v19, %v592_v29 }
  0xbd   :  { %v244_v48 = vrot.slane %v589_v28, 2 }
  0xbe   :  { %v608_v39 = vmul.f32 2.0, %v595_v30  ;;  %v305_v40 = vrot.slane %v598_v31, 2  ;;  %v153_v41 = vpop.permute.xlu1 %152  ;;  %v151_v42 = vpop.permute.xlu0 %150  ;;  %v304_v44 = vrot.slane %v601_v33, 2  ;;  %v216_v55 = vrot.slane %v595_v30, 2 }
  0xbf   :  { %v171_v45 = vsel %vm164_vm1, %v153_v41, 0.0  ;;  %v617_v46 = vsel %vm164_vm1, %v151_v42, 0.0  ;;  %v215_v61 = vrot.slane %v612_v43, 2  ;;  %v181_v18 = vmul.f32 2.0, %v612_v43 }
  0xc0   :  { %v191_v47 = vrot.slane %v608_v39, 1  ;;  %v179_v49 = vsub.f32 %v138_v27, %v171_v45  ;;  %v249_v50 = vrot.slane %v171_v45, 2  ;;  %v306_v51 = vsel %vm214_vm2, %v304_v44, %v305_v40 }
  0xc1   :  { %v626_v52 = vadd.f32 %v288_v38, %v171_v45  ;;  %v629_v53 = vsub.f32 %v137_v20, %v617_v46  ;;  %v248_v54 = vrot.slane %v617_v46, 2  ;;  %v321_v56 = vsub.f32 %v601_v33, %v306_v51 }
  0xc2   :  { %v184_v57 = vmul.f32 2.0, %v179_v49  ;;  %v221_v58 = vrot.slane %v179_v49, 2  ;;  %v122_v59 = vpop.permute.xlu1 %121  ;;  %v114_v60 = vpop.permute.xlu0 %113  ;;  %v638_v0 = vadd.f32 %v287_v37, %v617_v46  ;;  %v204_v5 = vadd.f32 %v191_v47, %v595_v30 }
  0xc3   :  { %v310_v62 = vrot.slane %v626_v52, 2  ;;  %v220_v63 = vrot.slane %v629_v53, 2  ;;  %327 = vst.msk [vmem:[#allocation9 + $0x1] sm:$0xff] %vm267_vm3, %v321_v56  ;;  %v139_v2 = vsel %vm131_vm0, 0.0, %v122_v59  ;;  %v135_v3 = vsel %vm131_vm0, 0.0, %v114_v60 }
  0xc4   :  { %v194_v1 = vrot.slane %v184_v57, 1  ;;  %v644_v4 = vmul.f32 2.0, %v629_v53  ;;  %v655_v7 = vsel %vm214_vm2, %v248_v54, %v249_v50  ;;  %v309_v8 = vrot.slane %v638_v0, 2 }
  0xc5   :  { %v222_v6 = vsel %vm214_vm2, %v220_v63, %v221_v58  ;;  %v289_v10 = vadd.f32 %v281_v32, %v139_v2  ;;  %v285_v11 = vadd.f32 %v277_v34, %v135_v3 }
  0xc6   :  { %v207_v9 = vadd.f32 %v194_v1, %v179_v49  ;;  %v155_v12 = vpop.permute.xlu1 %154  ;;  %v147_v13 = vpop.permute.xlu0 %146  ;;  %v193_v14 = vrot.slane %v644_v4, 1  ;;  %v311_v15 = vsel %vm214_vm2, %v309_v8, %v310_v62 }
  0xc7   :  { %v172_v16 = vsel %vm164_vm1, %v155_v12, 0.0  ;;  %v168_v17 = vsel %vm164_vm1, %v147_v13, 0.0  ;;  %v324_v19 = vsub.f32 %v638_v0, %v311_v15 }
  0xc8   :  { %v180_v20 = vsub.f32 %v139_v2, %v172_v16  ;;  %v251_v21 = vrot.slane %v172_v16, 2  ;;  %v297_v22 = vadd.f32 %v289_v10, %v172_v16  ;;  %v176_v23 = vsub.f32 %v135_v3, %v168_v17 }
  0xc9   :  { %v246_v24 = vrot.slane %v168_v17, 2  ;;  %v293_v25 = vadd.f32 %v285_v11, %v168_v17  ;;  %v195_v26 = vsel %vm189_vm4, %v193_v14, %v194_v1  ;;  %330 = vst.msk [vmem:[#allocation9 + $0x11] sm:$0xff] %vm267_vm3, %v324_v19 }
  0xca   :  { %v223_v27 = vrot.slane %v180_v20, 2  ;;  %v252_v32 = vsel %vm214_vm2, %v249_v50, %v251_v21  ;;  %v312_v34 = vrot.slane %v297_v22, 2  ;;  %v116_v37 = vpop.permute.xlu1 %115  ;;  %v108_v38 = vpop.permute.xlu0 %107  ;;  %v206_v41 = vadd.f32 %v195_v26, %v629_v53 }
  0xcb   :  { %v218_v42 = vrot.slane %v176_v23, 2  ;;  %v247_v45 = vsel %vm214_vm2, %v244_v48, %v246_v24  ;;  %v307_v49 = vrot.slane %v293_v25, 2  ;;  %v136_v51 = vsel %vm131_vm0, 0.0, %v116_v37 }
  0xcc   :  { %v224_v56 = vsel %vm214_vm2, %v221_v58, %v223_v27  ;;  %v313_v57 = vsel %vm214_vm2, %v310_v62, %v312_v34  ;;  %v286_v59 = vadd.f32 %v603_v35, %v136_v51  ;;  %v132_v50 = vsel %vm131_vm0, 0.0, %v108_v38 }
  0xcd   :  { %v236_v60 = vadd.f32 %v224_v56, %v207_v9  ;;  %v325_v1 = vsub.f32 %v626_v52, %v313_v57  ;;  %v219_v2 = vsel %vm214_vm2, %v216_v55, %v218_v42  ;;  %v308_v3 = vsel %vm214_vm2, %v305_v40, %v307_v49 }
  0xce   :  { %v233_v4 = vadd.f32 %v219_v2, %v204_v5  ;;  %v322_v58 = vsub.f32 %v598_v31, %v308_v3  ;;  %v282_v62 = vadd.f32 %v605_v36, %v132_v50  ;;  %v149_v10 = vpop.permute.xlu1 %148  ;;  %v235_v35 = vadd.f32 %v222_v6, %v206_v41  ;;  %v141_v11 = vpop.permute.xlu0 %140 }
  0xcf   :  { %v264_v12 = vsub.f32 %v236_v60, %v252_v32  ;;  %331 = vst.msk [vmem:[#allocation9 + $0x19] sm:$0x7f] %vm269_vm5, %v325_v1  ;;  %v169_v52 = vsel %vm164_vm1, %v149_v10, 0.0  ;;  %v190_v9 = vrot.slane %v181_v18, 1  ;;  %v165_v13 = vsel %vm164_vm1, %v141_v11, 0.0 }
  0xd0   :  { %v261_v15 = vsub.f32 %v233_v4, %v247_v45  ;;  %328 = vst.msk [vmem:[#allocation9 + $0x9] sm:$0x7f] %vm269_vm5, %v322_v58  ;;  %v177_v40 = vsub.f32 %v136_v51, %v169_v52  ;;  %v263_v5 = vsub.f32 %v235_v35, %v655_v7  ;;  %v294_v31 = vadd.f32 %v286_v59, %v169_v52 }
  0xd1   :  { %v243_v36 = vrot.slane %v592_v29, 2  ;;  %273 = vst.msk [vmem:[#allocation8 + $0x19] sm:$0x7f] %vm269_vm5, %v264_v12  ;;  %v192_v6 = vsel %vm189_vm4, %v190_v9, %v191_v47  ;;  %v173_v16 = vsub.f32 %v132_v50, %v165_v13  ;;  %v290_v17 = vadd.f32 %v282_v62, %v165_v13 }
  0xd2   :  { %270 = vst.msk [vmem:[#allocation8 + $0x9] sm:$0x7f] %vm269_vm5, %v261_v15  ;;  %v205_v18 = vadd.f32 %v193_v14, %v177_v40  ;;  %v323_v19 = vsub.f32 %v294_v31, %v309_v8  ;;  %v203_v7 = vadd.f32 %v192_v6, %v612_v43  ;;  %v217_v29 = vsel %vm214_vm2, %v215_v61, %v216_v55 }
  0xd3   :  { %272 = vst.msk [vmem:[#allocation8 + $0x11] sm:$0xff] %vm267_vm3, %v263_v5  ;;  %v202_v39 = vadd.f32 %v190_v9, %v173_v16  ;;  %v320_v47 = vsub.f32 %v290_v17, %v304_v44  ;;  %v245_v30 = vsel %vm214_vm2, %v243_v36, %v244_v48 }
  0xd4   :  { %v234_v14 = vadd.f32 %v220_v63, %v205_v18  ;;  %329 = vst.msk [vmem:[#allocation9 + $0x9] sm:$0x80] %vm265_vm6, %v323_v19  ;;  %v232_v0 = vadd.f32 %v217_v29, %v203_v7 }
  0xd5   :  { %v231_v55 = vadd.f32 %v215_v61, %v202_v39  ;;  %326 = vst.msk [vmem:[#allocation9 - $0x7] sm:$0x80] %vm265_vm6, %v320_v47 }
  0xd6   :  { %v262_v33 = vsub.f32 %v234_v14, %v248_v54  ;;  %v260_v44 = vsub.f32 %v232_v0, %v245_v30 }
  0xd7   :  { %460 = shalt.err (!%p457_p6)
}
  0xd8   :  { %s461_s15 = scalar_lea.hbm %s757_s4, 512 }
  0xd9   :  { %p462_p7 = scmp.ne.s32.totalorder %s757_s4, %s461_s15  ;;  %p465_p8 = scmp.lt.u32.totalorder %s461_s15, %s757_s4 }
  0xdb   :  { %p467_p9 = pnand %p465_p8, %p462_p7 }
  0xdd   :  { %470 = shalt.err (!%p467_p9)
}
  0xde   :  { %355 = dma.vmem_to_hbm [thread:$0]  %s350_s9, 512, %s757_s4, [#allocation10], %s504_s5, %s504_s5, %s505_s6   ;;  %v259_v28 = vsub.f32 %v231_v55, %v243_v36  ;;  %271 = vst.msk [vmem:[#allocation8 + $0x9] sm:$0x80] %vm265_vm6, %v262_v33 }
  0xdf   :  { %268 = vst.msk [vmem:[#allocation8 + $0x1] sm:$0xff] %vm267_vm3, %v260_v44  ;;  %s471_s22 = scalar_lea.vmem %s338_s11, 512  ;;  %p476_p11 = scmp.lt.s32.totalorder %s338_s11, %s338_s11 }
  0xe0   :  { %266 = vst.msk [vmem:[#allocation8 - $0x7] sm:$0x80] %vm265_vm6, %v259_v28  ;;  %p472_p10 = scmp.ne.s32.totalorder %s338_s11, %s471_s22  ;;  %p477_p12 = scmp.lt.s32.totalorder %s471_s22, %s471_s22 }
  0xe2   :  { %p478_p13 = por %p477_p12, %p476_p11 }
  0xe4   :  { %p479_p0 = pnand %p478_p13, %p472_p10 }
  0xe6   :  { %482 = shalt.err (!%p479_p0)
}
  0xe7   :  { %s483_s25 = scalar_lea.hbm %s756_s3, 512 }
  0xe8   :  { %p484_p1 = scmp.ne.s32.totalorder %s756_s3, %s483_s25  ;;  %p487_p2 = scmp.lt.u32.totalorder %s483_s25, %s756_s3 }
  0xea   :  { %p489_p3 = pnand %p487_p2, %p484_p1 }
  0xec   :  { %492 = shalt.err (!%p489_p3)
}
  0xed   :  { %343 = dma.vmem_to_hbm [thread:$0]  %s338_s11, 512, %s756_s3, [#allocation4], %s504_s5, %s504_s5, %s505_s6  }
  0xee   :  { %497 = dma.done.wait [#allocation4], 512  }
  0xef   :  { %498 = vsyncadd [#allocation4], 4294966784 }
  0xf0   :  { %499 = dma.done.wait [#allocation10], 512  }
  0xf1   :  { %500 = vsyncadd [#allocation10], 4294966784 }
  0xf2   :  { %362 = vsyncpa [#allocation3], 1 }
  0xf3   :  { %363 = vsyncpa [#allocation6], 1 }
  0xf4   :  { %364 = vsyncpa [#allocation4], 1 }
  0xf5   :  { %365 = vsyncpa [#allocation10], 1 }

</bundles_post_ra>
